<compile_context>
chip_gen: v7x
topology: tpu7x:2x2x1
jax: 0.10.0
libtpu: 0.0.40
codegen_flags: <defaults>
</compile_context>

<pallas_src>
import math

import jax
import jax.numpy as jnp
from jax.experimental import pallas as pl
from jax.experimental.pallas import tpu as pltpu

_SQRT_2_OVER_PI = math.sqrt(2.0 / math.pi)


def _gelu_f32(h):
    # tanh-approx GELU in f32.  h*(1 + c*h*h) saves one vmul vs (h + c*h^3);
    # tanh lands on the EUP slot, which is free while the MXU is the critical unit.
    inner = _SQRT_2_OVER_PI * (h * (1.0 + 0.044715 * (h * h)))
    return 0.5 * h * (1.0 + jnp.tanh(inner))


def _ffn_kernel(x_ref, w1_ref, b1_ref, w2_ref, b2_ref, o_ref, acc_ref):
    j = pl.program_id(1)

    @pl.when(j == 0)
    def _():
        acc_ref[...] = jnp.zeros_like(acc_ref)

    # First projection tile + bias, f32 accumulate on the MXU.
    h = jnp.dot(x_ref[...], w1_ref[...], preferred_element_type=jnp.float32)
    h = h + b1_ref[...].astype(jnp.float32)

    # GELU fused into the matmul epilogue (activation never touches HBM).
    g = _gelu_f32(h)

    # Second projection: partial sum over the hidden (reduction) axis.
    acc_ref[...] += jnp.dot(
        g.astype(w2_ref.dtype), w2_ref[...], preferred_element_type=jnp.float32
    )

    @pl.when(j == pl.num_programs(1) - 1)
    def _():
        o_ref[...] = (acc_ref[...] + b2_ref[...].astype(jnp.float32)).astype(o_ref.dtype)


def _round_up(a, b):
    return (a + b - 1) // b * b


def _tpu_limits():
    """(physical VMEM bytes, tensorcores per device); conservative fallbacks."""
    vmem_cap = 64 * 1024 * 1024   # assume the smallest VMEM (v7x) if detection fails
    num_cores = 1
    try:
        info = pltpu.get_tpu_info()
        v = getattr(info, "vmem_capacity_bytes", None)
        if v:
            vmem_cap = int(v)
        for attr in ("num_cores", "tensorcores_per_chip", "num_tensorcores"):
            c = getattr(info, attr, None)
            if c:
                num_cores = int(c)
                break
    except Exception:
        pass
    return vmem_cap, num_cores


def _pick_hidden_tile(hidden):
    if hidden <= 512:
        return hidden  # full-extent block is always legal
    for cand in (512, 256, 128):
        if hidden % cand == 0:
            return cand
    return hidden  # ragged hidden: fall back to full extent


def feed_forward(x, w1, b1, w2, b2, *, compute_dtype=None):
    """y = GELU_tanh(x @ w1 + b1) @ w2 + b2, fused in one pallas_call.

    compute_dtype: optional (e.g. jnp.bfloat16) opt-in cast of x/W1/W2 for
    higher MXU throughput; accumulation stays in f32 and the output keeps the
    original input dtype.  Default (None) keeps the incoming dtypes.
    """
    orig_shape = x.shape
    out_dtype = x.dtype
    emb = orig_shape[-1]
    hidden = w1.shape[1]
    assert w1.shape == (emb, hidden) and w2.shape == (hidden, emb)

    x2 = x.reshape(-1, emb)
    if compute_dtype is not None:
        x2 = x2.astype(compute_dtype)
        w1 = w1.astype(compute_dtype)
        w2 = w2.astype(compute_dtype)
    rows = x2.shape[0]
    in_itemsize = jnp.dtype(x2.dtype).itemsize
    w_itemsize = jnp.dtype(w1.dtype).itemsize
    b_itemsize = jnp.dtype(b1.dtype).itemsize
    out_itemsize = jnp.dtype(out_dtype).itemsize

    # --- generation-aware VMEM budgets -------------------------------------
    vmem_cap, num_cores = _tpu_limits()
    # budget drives tile sizing; vmem_limit is the hard ceiling handed to Mosaic.
    budget = min(int(vmem_cap * 0.70), 64 * 1024 * 1024)     # ~44 MiB on v7x, 64 MiB on v5e/v6e
    vmem_limit = min(int(vmem_cap * 0.875), 96 * 1024 * 1024)  # ~56 MiB on v7x, 96 MiB on v5e/v6e

    # Sub-32-bit dtypes pack rows along sublanes: align tm accordingly.
    row_align = 8 * max(1, 4 // in_itemsize)   # 8 (f32), 16 (bf16), 32 (int8/fp8)

    th = _pick_hidden_tile(hidden)
    # tm controls HBM weight re-streaming (intensity ~ tm FLOP/byte): start big.
    tm = min(1024, _round_up(rows, row_align))

    def footprint(tm_, th_):
        # double-buffered pipeline buffers
        bufs = 2 * (
            tm_ * emb * in_itemsize          # x row tile
            + emb * th_ * w_itemsize         # W1 column tile
            + th_ * b_itemsize               # b1 tile
            + th_ * emb * w_itemsize         # W2 row tile
            + emb * b_itemsize               # b2
            + tm_ * emb * out_itemsize       # output tile
        )
        acc = tm_ * emb * 4                  # resident f32 accumulator
        temps = 2 * tm_ * th_ * 4            # f32 h and g intermediates
        scratch = 2 * 1024 * 1024            # compiler-internal scratch headroom
        return bufs + acc + temps + scratch

    # Shed VMEM from th first (floor 256 to keep the 256-wide MXU column full);
    # tm is sacrificed last because it controls weight traffic.
    while (footprint(tm, th) > budget and th > 256
           and (th // 2) % 128 == 0 and hidden % (th // 2) == 0):
        th //= 2
    while footprint(tm, th) > budget and tm > row_align:
        tm = max(row_align, _round_up(tm // 2, row_align))

    # Only on multi-TensorCore chips (v7x): ensure >= 2 row blocks so the
    # "parallel" axis can shard across cores.  On 1-TC chips this would just
    # double weight re-streaming, so it is gated on the detected core count.
    if num_cores >= 2 and rows > row_align and _round_up(rows, tm) // tm < 2:
        tm = max(row_align, _round_up(tm // 2, row_align))

    rows_pad = _round_up(max(rows, tm), tm)
    if rows_pad != rows:
        x2 = jnp.pad(x2, ((0, rows_pad - rows), (0, 0)))

    b1_2 = b1.reshape(1, hidden)
    b2_2 = b2.reshape(1, emb)

    grid = (rows_pad // tm, hidden // th)
    n_row_tiles = grid[0]

    cost = pl.CostEstimate(
        flops=4 * rows_pad * emb * hidden,
        transcendentals=rows_pad * hidden,
        bytes_accessed=(
            rows_pad * emb * (in_itemsize + out_itemsize)
            + n_row_tiles * (int(w1.size) + int(w2.size)) * w_itemsize
            + (hidden + emb) * b_itemsize
        ),
    )

    out2 = pl.pallas_call(
        _ffn_kernel,
        out_shape=jax.ShapeDtypeStruct((rows_pad, emb), out_dtype),
        grid_spec=pltpu.PrefetchScalarGridSpec(
            num_scalar_prefetch=0,
            grid=grid,
            in_specs=[
                pl.BlockSpec((tm, emb), lambda i, j: (i, 0)),      # x row tile
                pl.BlockSpec((emb, th), lambda i, j: (0, j)),      # W1 column tile
                pl.BlockSpec((1, th), lambda i, j: (0, j)),        # b1 tile
                pl.BlockSpec((th, emb), lambda i, j: (j, 0)),      # W2 row tile
                pl.BlockSpec((1, emb), lambda i, j: (0, 0)),       # b2 (full)
            ],
            out_specs=pl.BlockSpec((tm, emb), lambda i, j: (i, 0)),
            scratch_shapes=[pltpu.VMEM((tm, emb), jnp.float32)],
        ),
        compiler_params=pltpu.CompilerParams(
            dimension_semantics=("parallel", "arbitrary"),
            vmem_limit_bytes=vmem_limit,
        ),
        cost_estimate=cost,
    )(x2, w1, b1_2, w2, b2_2)

    if rows_pad != rows:
        out2 = out2[:rows]
    return out2.reshape(orig_shape).astype(out_dtype)


def _ffn_ref(x, w1, b1, w2, b2):
    h = jnp.dot(x, w1, precision=jax.lax.Precision.HIGHEST) + b1
    g = 0.5 * h * (1.0 + jnp.tanh(_SQRT_2_OVER_PI * (h + 0.044715 * h**3)))
    return jnp.dot(g, w2, precision=jax.lax.Precision.HIGHEST) + b2


if __name__ == "__main__":
    key = jax.random.PRNGKey(0)
    k_x, k_w1, k_b1, k_w2, k_b2 = jax.random.split(key, 5)

    # Small shapes consistent with the module: batch=2, seq=8, emb_dim=32
    batch, seq, emb = 2, 8, 32
    hidden = 4 * emb

    x = jax.random.normal(k_x, (batch, seq, emb), dtype=jnp.float32)
    w1 = jax.random.normal(k_w1, (emb, hidden), dtype=jnp.float32) * 0.05
    b1 = jax.random.normal(k_b1, (hidden,), dtype=jnp.float32) * 0.02
    w2 = jax.random.normal(k_w2, (hidden, emb), dtype=jnp.float32) * 0.05
    b2 = jax.random.normal(k_b2, (emb,), dtype=jnp.float32) * 0.02

    y = feed_forward(x, w1, b1, w2, b2)
    y = jax.block_until_ready(y)

    y_ref = _ffn_ref(x, w1, b1, w2, b2)
    assert y.shape == x.shape and y.dtype == x.dtype
    assert jnp.allclose(y, y_ref, atol=5e-3, rtol=5e-3), float(jnp.max(jnp.abs(y - y_ref)))

    print("KERNEL_OK")
</pallas_src>

<mosaic_0001>
module attributes {stable_mosaic.version = 11 : i64} {
  func.func @_ffn_kernel(%arg0: i32, %arg1: i32, %arg2: memref<16x32xf32, #tpu.memory_space<vmem>>, %arg3: memref<32x128xf32, #tpu.memory_space<vmem>>, %arg4: memref<1x128xf32, #tpu.memory_space<vmem>>, %arg5: memref<128x32xf32, #tpu.memory_space<vmem>>, %arg6: memref<1x32xf32, #tpu.memory_space<vmem>>, %arg7: memref<16x32xf32, #tpu.memory_space<vmem>>, %arg8: memref<16x32xf32, #tpu.memory_space<vmem>>) attributes {dimension_semantics = [#tpu.dimension_semantics<parallel>, #tpu.dimension_semantics<arbitrary>], iteration_bounds = array<i64: 1, 1>, scalar_prefetch = 0 : i64, scratch_operands = 1 : i64, tpu.core_type = #tpu.core_type<tc>, window_params = [{transform_indices = @transform_0, window_bounds = array<i64: 16, 32>}, {transform_indices = @transform_1, window_bounds = array<i64: 32, 128>}, {transform_indices = @transform_2, window_bounds = array<i64: 1, 128>}, {transform_indices = @transform_3, window_bounds = array<i64: 128, 32>}, {pipeline_mode = #tpu.pipeline_mode<synchronous>, transform_indices = @transform_4, window_bounds = array<i64: 1, 32>}, {transform_indices = @transform_5, window_bounds = array<i64: 16, 32>}]} {
    %c0_i32 = arith.constant 0 : i32
    %0 = arith.cmpi eq, %arg1, %c0_i32 : i32
    %1 = arith.extui %0 : i1 to i32
    %c0_i32_0 = arith.constant 0 : i32
    %2 = arith.cmpi ne, %1, %c0_i32_0 : i32
    scf.if %2 {
      %cst_20 = arith.constant 0.000000e+00 : f32
      %31 = vector.broadcast %cst_20 : f32 to vector<16x32xf32>
      %c0_21 = arith.constant 0 : index
      %c0_22 = arith.constant 0 : index
      %32 = vector.load %arg8[%c0_21, %c0_22] : memref<16x32xf32, #tpu.memory_space<vmem>>, vector<16x32xf32>
      tpu.vector_store %arg8[%c0_21, %c0_22], %31 {strides = array<i32>} : memref<16x32xf32, #tpu.memory_space<vmem>>, vector<16x32xf32>,
    } else {
    }
    %c0 = arith.constant 0 : index
    %c0_1 = arith.constant 0 : index
    %3 = vector.load %arg2[%c0, %c0_1] : memref<16x32xf32, #tpu.memory_space<vmem>>, vector<16x32xf32>
    %c0_2 = arith.constant 0 : index
    %c0_3 = arith.constant 0 : index
    %4 = vector.load %arg3[%c0_2, %c0_3] : memref<32x128xf32, #tpu.memory_space<vmem>>, vector<32x128xf32>
    %cst = arith.constant dense<0.000000e+00> : vector<16x128xf32>
    %5 = tpu.matmul %3, %4, %cst {dimension_numbers = #tpu.dot_dimension_numbers<[1], [0], [0], [1], [0, 0, 1, 1], [], []>} : vector<16x32xf32>, vector<32x128xf32>, vector<16x128xf32> -> vector<16x128xf32>
    %c0_4 = arith.constant 0 : index
    %c0_5 = arith.constant 0 : index
    %6 = vector.load %arg4[%c0_4, %c0_5] : memref<1x128xf32, #tpu.memory_space<vmem>>, vector<1x128xf32>
    %7 = vector.broadcast %6 : vector<1x128xf32> to vector<16x128xf32>
    %8 = arith.addf %5, %7 : vector<16x128xf32>
    %9 = arith.mulf %8, %8 : vector<16x128xf32>
    %cst_6 = arith.constant 4.471500e-02 : f32
    %10 = vector.broadcast %cst_6 : f32 to vector<16x128xf32>
    %11 = arith.mulf %10, %9 : vector<16x128xf32>
    %cst_7 = arith.constant 1.000000e+00 : f32
    %12 = vector.broadcast %cst_7 : f32 to vector<16x128xf32>
    %13 = arith.addf %12, %11 : vector<16x128xf32>
    %14 = arith.mulf %8, %13 : vector<16x128xf32>
    %cst_8 = arith.constant 0.797884583 : f32
    %15 = vector.broadcast %cst_8 : f32 to vector<16x128xf32>
    %16 = arith.mulf %15, %14 : vector<16x128xf32>
    %cst_9 = arith.constant 5.000000e-01 : f32
    %17 = vector.broadcast %cst_9 : f32 to vector<16x128xf32>
    %18 = arith.mulf %17, %8 : vector<16x128xf32>
    %19 = math.tanh %16 : vector<16x128xf32>
    %cst_10 = arith.constant 1.000000e+00 : f32
    %20 = vector.broadcast %cst_10 : f32 to vector<16x128xf32>
    %21 = arith.addf %20, %19 : vector<16x128xf32>
    %22 = arith.mulf %18, %21 : vector<16x128xf32>
    %c0_11 = arith.constant 0 : index
    %c0_12 = arith.constant 0 : index
    %23 = vector.load %arg8[%c0_11, %c0_12] : memref<16x32xf32, #tpu.memory_space<vmem>>, vector<16x32xf32>
    %c0_13 = arith.constant 0 : index
    %c0_14 = arith.constant 0 : index
    %24 = vector.load %arg5[%c0_13, %c0_14] : memref<128x32xf32, #tpu.memory_space<vmem>>, vector<128x32xf32>
    %cst_15 = arith.constant dense<0.000000e+00> : vector<16x32xf32>
    %25 = tpu.matmul %22, %24, %cst_15 {dimension_numbers = #tpu.dot_dimension_numbers<[1], [0], [0], [1], [0, 0, 1, 1], [], []>} : vector<16x128xf32>, vector<128x32xf32>, vector<16x32xf32> -> vector<16x32xf32>
    %26 = arith.addf %23, %25 : vector<16x32xf32>
    %c0_16 = arith.constant 0 : index
    %c0_17 = arith.constant 0 : index
    %27 = vector.load %arg8[%c0_16, %c0_17] : memref<16x32xf32, #tpu.memory_space<vmem>>, vector<16x32xf32>
    tpu.vector_store %arg8[%c0_16, %c0_17], %26 {strides = array<i32>} : memref<16x32xf32, #tpu.memory_space<vmem>>, vector<16x32xf32>,
    %c0_i32_18 = arith.constant 0 : i32
    %28 = arith.cmpi eq, %arg1, %c0_i32_18 : i32
    %29 = arith.extui %28 : i1 to i32
    %c0_i32_19 = arith.constant 0 : i32
    %30 = arith.cmpi ne, %29, %c0_i32_19 : i32
    scf.if %30 {
      %c0_20 = arith.constant 0 : index
      %c0_21 = arith.constant 0 : index
      %31 = vector.load %arg8[%c0_20, %c0_21] : memref<16x32xf32, #tpu.memory_space<vmem>>, vector<16x32xf32>
      %c0_22 = arith.constant 0 : index
      %c0_23 = arith.constant 0 : index
      %32 = vector.load %arg6[%c0_22, %c0_23] : memref<1x32xf32, #tpu.memory_space<vmem>>, vector<1x32xf32>
      %33 = vector.broadcast %32 : vector<1x32xf32> to vector<16x32xf32>
      %34 = arith.addf %31, %33 : vector<16x32xf32>
      %c0_24 = arith.constant 0 : index
      %c0_25 = arith.constant 0 : index
      %35 = vector.load %arg7[%c0_24, %c0_25] : memref<16x32xf32, #tpu.memory_space<vmem>>, vector<16x32xf32>
      tpu.vector_store %arg7[%c0_24, %c0_25], %34 {strides = array<i32>} : memref<16x32xf32, #tpu.memory_space<vmem>>, vector<16x32xf32>,
    } else {
    }
    return
  }
  func.func @transform_0(%arg0: i32, %arg1: i32) -> (i32, i32) {
    %c0_i32 = arith.constant 0 : i32
    %c0_i32_0 = arith.constant 0 : i32
    return %arg0, %c0_i32 : i32, i32
  }
  func.func @transform_1(%arg0: i32, %arg1: i32) -> (i32, i32) {
    %c0_i32 = arith.constant 0 : i32
    %c0_i32_0 = arith.constant 0 : i32
    return %c0_i32, %arg1 : i32, i32
  }
  func.func @transform_2(%arg0: i32, %arg1: i32) -> (i32, i32) {
    %c0_i32 = arith.constant 0 : i32
    %c0_i32_0 = arith.constant 0 : i32
    return %c0_i32, %arg1 : i32, i32
  }
  func.func @transform_3(%arg0: i32, %arg1: i32) -> (i32, i32) {
    %c0_i32 = arith.constant 0 : i32
    %c0_i32_0 = arith.constant 0 : i32
    return %arg1, %c0_i32 : i32, i32
  }
  func.func @transform_4(%arg0: i32, %arg1: i32) -> (i32, i32) {
    %c0_i32 = arith.constant 0 : i32
    %c0_i32_0 = arith.constant 0 : i32
    %c0_i32_1 = arith.constant 0 : i32
    return %c0_i32, %c0_i32_0 : i32, i32
  }
  func.func @transform_5(%arg0: i32, %arg1: i32) -> (i32, i32) {
    %c0_i32 = arith.constant 0 : i32
    %c0_i32_0 = arith.constant 0 : i32
    return %arg0, %c0_i32 : i32, i32
  }
}

</mosaic_0001>

<bundles_post_ra>
// kernel: tpu_custom_call.1
= control target key start
LH: loop header
LB: loop body
LE: loop exit
PB: predicated region body
PF: predicated region fallthrough
CT: control target
= control target key end

     0   :  { %vm25_vm0 = vcmask 261120   ;;  %s542_s0 = inlined_call_operand.vmem [shape: f32[16,32], index: 0, kind: input, shape index: {}]   ;;  %s543_s1 = inlined_call_operand.vmem [shape: f32[32,128], index: 1, kind: input, shape index: {}]   ;;  %s544_s2 = inlined_call_operand.vmem [shape: f32[1,128], index: 2, kind: input, shape index: {}]   ;;  %s545_s3 = inlined_call_operand.vmem [shape: f32[128,32], index: 3, kind: input, shape index: {}]   ;;  %s546_s4 = inlined_call_operand.vmem [shape: f32[1,32], index: 4, kind: input, shape index: {}]   ;;  %s547_s5 = inlined_call_operand.hbm [shape: f32[16,32], index: 5, kind: output, shape index: {}]  }
   0x1   :  { %v30_v0 = vld [vmem:[%s543_s1] sm:$0xff]  ;;  %v31_v1 = vld [vmem:[%s543_s1 + $0x8] sm:$0xff]  ;;  %v32_v2 = vld [vmem:[%s543_s1 + $0x10] sm:$0xff] }
   0x2   :  { %v344_v3 = vpack.c.bf16 %v31_v1, %v30_v0  ;;  %v33_v4 = vld [vmem:[%s543_s1 + $0x18] sm:$0xff]  ;;  %v28_v5 = vld [vmem:[%s542_s0] sm:$0xff]  ;;  %v144_v8 = vld [vmem:[%s545_s3 + $0x8] sm:$0xff] }
   0x3   :  { %v348_v6 = vpack.c.bf16 %v33_v4, %v32_v2  ;;  %306 = vmatprep.mubr.msk.f32.mxu0 %vm25_vm0, %v28_v5  ;;  %v143_v7 = vld [vmem:[%s545_s3] sm:$0xff] }
   0x4   :  { %10 = vsyncpa [#allocation4], 0  ;;  %345 = vmatprep.subr.bf16.mxu0 %v344_v3  ;;  %v352_v9 = vpack.c.bf16 %v144_v8, %v143_v7  ;;  %v29_v10 = vld [vmem:[%s542_s0 + $0x8] sm:$0xff]  ;;  %v145_v11 = vld [vmem:[%s545_s3 + $0x10] sm:$0xff]  ;;  %v416_v32 = vmov 0.0   ;;  %s417_s11 = smov [#allocation3]  }
   0x5   :  { %347 = vmatpush3.bf16.msra.mxu0 %v344_v3  ;;  %v146_v12 = vld [vmem:[%s545_s3 + $0x18] sm:$0xff]  ;;  %v147_v14 = vld [vmem:[%s545_s3 + $0x20] sm:$0xff]  ;;  %v148_v15 = vld [vmem:[%s545_s3 + $0x28] sm:$0xff]  ;;  %27 = vst.msk [vmem:[#allocation2 + $0x8] sm:$0xff] %vm25_vm0, %v416_v32  ;;  %s259_s12 = sshll.u32 %s417_s11, 4  ;;  %s260_s12 = int_to_ptr.vmem [resolvable:$true] %s259_s12 }
   0x6   :  { %349 = vmatprep.subr.bf16.mxu0 %v348_v6  ;;  %353 = vmatprep.subr.bf16.mxu1 %v352_v9  ;;  %v356_v13 = vpack.c.bf16 %v146_v12, %v145_v11  ;;  %v360_v16 = vpack.c.bf16 %v148_v15, %v147_v14  ;;  %v149_v17 = vld [vmem:[%s545_s3 + $0x30] sm:$0xff]  ;;  %v150_v18 = vld [vmem:[%s545_s3 + $0x38] sm:$0xff]  ;;  %v151_v20 = vld [vmem:[%s545_s3 + $0x40] sm:$0xff]  ;;  %26 = vst.msk [vmem:[#allocation2] sm:$0xff] %vm25_vm0, %v416_v32  ;;  %s392_s13 = scalar_lea.vmem %s260_s12, 256  ;;  %p397_p1 = scmp.lt.s32.totalorder %s260_s12, %s260_s12 }
   0x7   :  { %355 = vmatpush3.bf16.msra.mxu1 %v352_v9  ;;  %v364_v19 = vpack.c.bf16 %v150_v18, %v149_v17  ;;  %v152_v21 = vld [vmem:[%s545_s3 + $0x48] sm:$0xff]  ;;  %v153_v23 = vld [vmem:[%s545_s3 + $0x50] sm:$0xff]  ;;  %v154_v24 = vld [vmem:[%s545_s3 + $0x58] sm:$0xff]  ;;  %p393_p0 = scmp.ne.s32.totalorder %s260_s12, %s392_s13  ;;  %p398_p2 = scmp.lt.s32.totalorder %s392_s13, %s392_s13 }
   0x8   :  { %357 = vmatprep.subr.bf16.mxu1 %v356_v13  ;;  %v368_v22 = vpack.c.bf16 %v152_v21, %v151_v20  ;;  %v155_v25 = vld [vmem:[%s545_s3 + $0x60] sm:$0xff]  ;;  %v372_v26 = vpack.c.bf16 %v154_v24, %v153_v23  ;;  %v156_v27 = vld [vmem:[%s545_s3 + $0x68] sm:$0xff]  ;;  %v157_v29 = vld [vmem:[%s545_s3 + $0x70] sm:$0xff] }
   0x9   :  { %351 = vmatpush3.bf16.msra.mxu0 %v348_v6  ;;  %v376_v28 = vpack.c.bf16 %v156_v27, %v155_v25  ;;  %v158_v30 = vld [vmem:[%s545_s3 + $0x78] sm:$0xff]  ;;  %v270_v33 = vld [vmem:[%s544_s2] ss:$0 sm:$0xff]  ;;  %p399_p3 = por %p398_p2, %p397_p1 }
   0xa   :  { %v380_v31 = vpack.c.bf16 %v158_v30, %v157_v29  ;;  %v273_v62 = vld [vmem:[%s546_s4] ss:$0 sm:$0xff] }
   0xb   :  { %359 = vmatpush3.bf16.msra.mxu1 %v356_v13  ;;  %p400_p4 = pnand %p399_p3, %p393_p0 }
   0xc   :  { %307 = vmatmul.mubr.msk.f32.vlgmr.msra.gmra.mrb[0].mxu0 %vm25_vm0, %v29_v10  ;;  %361 = vmatprep.subr.bf16.mxu1 %v360_v16  ;;  %v142_v56 = vld [vmem:[#allocation2 + $0x8] sm:$0xff] }
   0xd   :  { %v141_v57 = vld [vmem:[#allocation2] sm:$0xff] }
   0xf   :  { %363 = vmatpush3.bf16.msra.mxu1 %v360_v16 }
  0x10   :  { %365 = vmatprep.subr.bf16.mxu1 %v364_v19 }
  0x13   :  { %367 = vmatpush3.bf16.msra.mxu1 %v364_v19 }
  0x14   :  { %369 = vmatprep.subr.bf16.mxu1 %v368_v22 }
  0x17   :  { %371 = vmatpush3.bf16.msra.mxu1 %v368_v22 }
  0x18   :  { %373 = vmatprep.subr.bf16.mxu1 %v372_v26 }
  0x1b   :  { %375 = vmatpush3.bf16.msra.mxu1 %v372_v26 }
  0x1c   :  { %377 = vmatprep.subr.bf16.mxu1 %v376_v28 }
  0x1f   :  { %379 = vmatpush3.bf16.msra.mxu1 %v376_v28 }
  0x20   :  { %381 = vmatprep.subr.bf16.mxu1 %v380_v31 }
  0x23   :  { %383 = vmatpush3.bf16.msra.mxu1 %v380_v31 }
  0xdf   :  { %v308_v34 = vpop.f32.mrb[0].mxu0 }
  0xe0   :  { %v120_v35 = vadd.f32 %v308_v34, %v270_v33  ;;  %v114_v36 = vpop.f32.mrb[1].mxu0 }
  0xe1   :  { %v115_v37 = vadd.f32 %v270_v33, %v114_v36 }
  0xe2   :  { %v124_v38 = vmul.f32 %v120_v35, %v120_v35  ;;  %v134_v53 = vmul.f32 0.5, %v120_v35 }
  0xe3   :  { %v123_v39 = vmul.f32 %v115_v37, %v115_v37  ;;  %v133_v51 = vmul.f32 0.5, %v115_v37 }
  0xe4   :  { %v126_v40 = vmul.f32 0.044715, %v124_v38 }
  0xe5   :  { %v125_v41 = vmul.f32 0.044715, %v123_v39 }
  0xe6   :  { %v128_v42 = vadd.f32 1.0, %v126_v40 }
  0xe7   :  { %v127_v43 = vadd.f32 1.0, %v125_v41 }
  0xe8   :  { %v130_v44 = vmul.f32 %v128_v42, %v120_v35 }
  0xe9   :  { %v129_v45 = vmul.f32 %v127_v43, %v115_v37 }
  0xea   :  { %v132_v46 = vmul.f32 0.7978846, %v130_v44 }
  0xeb   :  { %v131_v47 = vmul.f32 0.7978846, %v129_v45 }
  0xec   :  { %388 = vtanh.f32 %v132_v46 }
  0xed   :  { %390 = vtanh.f32 %v131_v47 }
  0xf6   :  { %v389_v48 = vpop.eup %388 }
  0xf7   :  { %v391_v49 = vpop.eup %390  ;;  %v138_v50 = vadd.f32 1.0, %v389_v48 }
  0xf8   :  { %v137_v52 = vadd.f32 1.0, %v391_v49 }
  0xf9   :  { %v140_v55 = vmul.f32 %v138_v50, %v134_v53 }
  0xfa   :  { %v139_v54 = vmul.f32 %v137_v52, %v133_v51 }
  0xfc   :  { %341 = vmatprep.mubr.f32.mxu1 %v139_v54 }
  0xfd   :  { %342 = vmatmul.mubr.f32.vlgmr.msra.gmra.mrb[0].mxu1 %v140_v55 }
 0x1d0   :  { %v343_v58 = vpop.f32.mrb[0].mxu1 }
 0x1d1   :  { %v235_v59 = vadd.f32 %v343_v58, %v142_v56  ;;  %v225_v60 = vpop.f32.mrb[1].mxu1 }
 0x1d2   :  { %v234_v61 = vadd.f32 %v225_v60, %v141_v57 }
 0x1d3   :  { %237 = vst.msk [vmem:[#allocation2 + $0x8] sm:$0xff] %vm25_vm0, %v235_v59 }
 0x1d4   :  { %236 = vst.msk [vmem:[#allocation2] sm:$0xff] %vm25_vm0, %v234_v61 }
 0x1da   :  { %v242_v63 = vld [vmem:[#allocation2 + $0x8] sm:$0xff] }
 0x1db   :  { %v241_v0 = vld [vmem:[#allocation2] sm:$0xff]  ;;  %v251_v1 = vadd.f32 %v273_v62, %v242_v63 }
 0x1dc   :  { %v250_v2 = vadd.f32 %v273_v62, %v241_v0 }
 0x1dd   :  { %253 = vst.msk [vmem:[#allocation3 + $0x8] sm:$0xff] %vm25_vm0, %v251_v1 }
 0x1de   :  { %252 = vst.msk [vmem:[#allocation3] sm:$0xff] %vm25_vm0, %v250_v2 }
 0x1df   :  { %403 = shalt.err (!%p400_p4)
}
 0x1e0   :  { %s404_s15 = scalar_lea.hbm %s547_s5, 256 }
 0x1e1   :  { %p405_p5 = scmp.ne.s32.totalorder %s547_s5, %s404_s15  ;;  %p408_p6 = scmp.lt.u32.totalorder %s404_s15, %s547_s5 }
 0x1e3   :  { %p410_p7 = pnand %p408_p6, %p405_p5 }
 0x1e5   :  { %413 = shalt.err (!%p410_p7)
}
 0x1e6   :  { %s418_s19 = smov 128   ;;  %s419_s20 = smov 8  }
 0x1e7   :  { %265 = dma.vmem_to_hbm [thread:$0]  %s260_s12, 256, %s547_s5, [#allocation4], %s418_s19, %s418_s19, %s419_s20  }
 0x1e8   :  { %414 = dma.done.wait [#allocation4], 256  }
 0x1e9   :  { %415 = vsyncadd [#allocation4], 4294967040 }
 0x1ea   :  { %269 = vsyncpa [#allocation4], 1 }

</bundles_post_ra>
